<compile_context>
chip_gen: v7x
topology: tpu7x:2x2x1
jax: 0.10.0
libtpu: 0.0.40
codegen_flags: <defaults>
</compile_context>

<pallas_src>
import functools

import jax
import jax.numpy as jnp
from jax.experimental import pallas as pl
from jax.experimental.pallas import tpu as pltpu


def _round_up(n: int, m: int) -> int:
    return ((n + m - 1) // m) * m


def _silu(x):
    # silu(x) = x * sigmoid(x); exp and approximate reciprocal both occupy the
    # EUP slot, leaving the VALU free for the bias add / final multiply.
    return x * pl.reciprocal(1.0 + jnp.exp(-x), approx=True)


def basic_net_kernel(x_ref, w1_ref, b1_ref, w2_ref, b2_ref, o_ref):
    x = x_ref[...]                                   # (TB, F) bf16
    # lin1 (bf16 operands, f32 accumulate) + bias + SiLU in f32
    h = jnp.dot(x, w1_ref[...], preferred_element_type=jnp.float32)
    h = _silu(h + b1_ref[...])                       # (TB, H_pad) f32
    # dropout(p=0.5) -> identity in eval mode
    # lin2 (cast hidden back to bf16 for the MXU) + bias + SiLU in f32
    y = jnp.dot(h.astype(w2_ref.dtype), w2_ref[...],
                preferred_element_type=jnp.float32)
    y = _silu(y + b2_ref[...])                       # (TB, C_pad) f32
    o_ref[...] = y.astype(o_ref.dtype)


@functools.partial(jax.jit, static_argnames=("block_batch",))
def basic_net_forward(x, w1, b1, w2, b2, *, block_batch=512):
    """x: (B, F) f32; w1: (F, H); b1: (1, H); w2: (H, C); b2: (1, C)."""
    B, F = x.shape
    H = w1.shape[1]
    C = w2.shape[1]

    # Lane-dense padding of the hidden/class axes (multiples of 128).
    H_pad = _round_up(H, 128)
    C_pad = _round_up(C, 128)

    # Batch tile: multiple of the sublane size, capped by block_batch.
    TB = min(block_batch, _round_up(B, 8))
    B_pad = _round_up(B, TB)

    # Pad + cast matmul operands to bf16 (zero padding keeps results exact:
    # SiLU(0) = 0 and padded W2 rows/cols are zero; padded outputs are sliced).
    x_p = jnp.pad(x, ((0, B_pad - B), (0, 0))).astype(jnp.bfloat16)
    w1_p = jnp.pad(w1, ((0, 0), (0, H_pad - H))).astype(jnp.bfloat16)
    b1_p = jnp.pad(b1, ((0, 0), (0, H_pad - H)))                 # f32
    w2_p = jnp.pad(w2, ((0, H_pad - H), (0, C_pad - C))).astype(jnp.bfloat16)
    b2_p = jnp.pad(b2, ((0, 0), (0, C_pad - C)))                 # f32

    grid = (B_pad // TB,)
    out = pl.pallas_call(
        basic_net_kernel,
        out_shape=jax.ShapeDtypeStruct((B_pad, C_pad), jnp.float32),
        grid=grid,
        in_specs=[
            # Activations: tiled over batch, pipelined.
            pl.BlockSpec((TB, F), lambda i: (i, 0)),
            # Weights / biases: constant block -> VMEM-resident, DMA'd once.
            pl.BlockSpec((F, H_pad), lambda i: (0, 0)),
            pl.BlockSpec((1, H_pad), lambda i: (0, 0)),
            pl.BlockSpec((H_pad, C_pad), lambda i: (0, 0)),
            pl.BlockSpec((1, C_pad), lambda i: (0, 0)),
        ],
        out_specs=pl.BlockSpec((TB, C_pad), lambda i: (i, 0)),
        compiler_params=pltpu.CompilerParams(
            dimension_semantics=("parallel",)),
    )(x_p, w1_p, b1_p, w2_p, b2_p)

    return out[:B, :C]


def init_params(key, num_features, num_intermediate_nodes, num_classes):
    """Deterministic init mimicking nn.Linear's uniform(-1/sqrt(fan_in), +)."""
    k1, k2, k3, k4 = jax.random.split(key, 4)
    lim1 = 1.0 / jnp.sqrt(num_features)
    lim2 = 1.0 / jnp.sqrt(num_intermediate_nodes)
    # Stored already transposed: (in, out)
    w1 = jax.random.uniform(k1, (num_features, num_intermediate_nodes),
                            jnp.float32, -lim1, lim1)
    b1 = jax.random.uniform(k2, (1, num_intermediate_nodes),
                            jnp.float32, -lim1, lim1)
    w2 = jax.random.uniform(k3, (num_intermediate_nodes, num_classes),
                            jnp.float32, -lim2, lim2)
    b2 = jax.random.uniform(k4, (1, num_classes),
                            jnp.float32, -lim2, lim2)
    return w1, b1, w2, b2


if __name__ == "__main__":
    key = jax.random.PRNGKey(0)
    batch = 8
    num_features = 32
    num_intermediate_nodes = 64
    num_classes = 16

    kx, kp = jax.random.split(key)
    x = jax.random.normal(kx, (batch, num_features), dtype=jnp.float32)
    w1, b1, w2, b2 = init_params(kp, num_features, num_intermediate_nodes,
                                 num_classes)

    out = basic_net_forward(x, w1, b1, w2, b2)
    out = jax.block_until_ready(out)

    # Pure-JAX reference mirroring the kernel's bf16 matmul-operand rounding
    # (f32 accumulation / epilogue), exact sigmoid.
    def silu(v):
        return v * jax.nn.sigmoid(v)

    xb = x.astype(jnp.bfloat16).astype(jnp.float32)
    w1b = w1.astype(jnp.bfloat16).astype(jnp.float32)
    w2b = w2.astype(jnp.bfloat16).astype(jnp.float32)
    h_ref = silu(xb @ w1b + b1)
    h_ref = h_ref.astype(jnp.bfloat16).astype(jnp.float32)
    ref = silu(h_ref @ w2b + b2)

    assert out.shape == (batch, num_classes)
    # Loose-ish tolerance: kernel uses EUP approximate reciprocal in SiLU.
    assert jnp.allclose(out, ref, atol=1e-2, rtol=1e-2)

    print("KERNEL_OK")
</pallas_src>

<mosaic_0001>
module attributes {stable_mosaic.version = 11 : i64} {
  func.func @basic_net_kernel(%arg0: i32, %arg1: memref<8x32xbf16, #tpu.memory_space<vmem>>, %arg2: memref<32x128xbf16, #tpu.memory_space<vmem>>, %arg3: memref<1x128xf32, #tpu.memory_space<vmem>>, %arg4: memref<128x128xbf16, #tpu.memory_space<vmem>>, %arg5: memref<1x128xf32, #tpu.memory_space<vmem>>, %arg6: memref<8x128xf32, #tpu.memory_space<vmem>>) attributes {dimension_semantics = [#tpu.dimension_semantics<parallel>], iteration_bounds = array<i64: 1>, scalar_prefetch = 0 : i64, scratch_operands = 0 : i64, tpu.core_type = #tpu.core_type<tc>, window_params = [{transform_indices = @transform_0, window_bounds = array<i64: 8, 32>}, {pipeline_mode = #tpu.pipeline_mode<synchronous>, transform_indices = @transform_1, window_bounds = array<i64: 32, 128>}, {pipeline_mode = #tpu.pipeline_mode<synchronous>, transform_indices = @transform_2, window_bounds = array<i64: 1, 128>}, {pipeline_mode = #tpu.pipeline_mode<synchronous>, transform_indices = @transform_3, window_bounds = array<i64: 128, 128>}, {pipeline_mode = #tpu.pipeline_mode<synchronous>, transform_indices = @transform_4, window_bounds = array<i64: 1, 128>}, {transform_indices = @transform_5, window_bounds = array<i64: 8, 128>}]} {
    %c0 = arith.constant 0 : index
    %c0_0 = arith.constant 0 : index
    %0 = vector.load %arg1[%c0, %c0_0] : memref<8x32xbf16, #tpu.memory_space<vmem>>, vector<8x32xbf16>
    %c0_1 = arith.constant 0 : index
    %c0_2 = arith.constant 0 : index
    %1 = vector.load %arg2[%c0_1, %c0_2] : memref<32x128xbf16, #tpu.memory_space<vmem>>, vector<32x128xbf16>
    %cst = arith.constant dense<0.000000e+00> : vector<8x128xf32>
    %2 = tpu.matmul %0, %1, %cst {dimension_numbers = #tpu.dot_dimension_numbers<[1], [0], [0], [1], [0, 0, 1, 1], [], []>} : vector<8x32xbf16>, vector<32x128xbf16>, vector<8x128xf32> -> vector<8x128xf32>
    %c0_3 = arith.constant 0 : index
    %c0_4 = arith.constant 0 : index
    %3 = vector.load %arg3[%c0_3, %c0_4] : memref<1x128xf32, #tpu.memory_space<vmem>>, vector<1x128xf32>
    %4 = vector.broadcast %3 : vector<1x128xf32> to vector<8x128xf32>
    %5 = arith.addf %2, %4 : vector<8x128xf32>
    %cst_5 = arith.constant 0.000000e+00 : f32
    %6 = vector.broadcast %cst_5 : f32 to vector<8x128xf32>
    %7 = arith.subf %6, %5 : vector<8x128xf32>
    %8 = math.exp %7 : vector<8x128xf32>
    %cst_6 = arith.constant 1.000000e+00 : f32
    %9 = vector.broadcast %cst_6 : f32 to vector<8x128xf32>
    %10 = arith.addf %9, %8 : vector<8x128xf32>
    %11 = tpu.reciprocal %10 {approx = true} : vector<8x128xf32> -> vector<8x128xf32>
    %12 = arith.mulf %5, %11 : vector<8x128xf32>
    %13 = arith.truncf %12 : vector<8x128xf32> to vector<8x128xbf16>
    %c0_7 = arith.constant 0 : index
    %c0_8 = arith.constant 0 : index
    %14 = vector.load %arg4[%c0_7, %c0_8] : memref<128x128xbf16, #tpu.memory_space<vmem>>, vector<128x128xbf16>
    %cst_9 = arith.constant dense<0.000000e+00> : vector<8x128xf32>
    %15 = tpu.matmul %13, %14, %cst_9 {dimension_numbers = #tpu.dot_dimension_numbers<[1], [0], [0], [1], [0, 0, 1, 1], [], []>} : vector<8x128xbf16>, vector<128x128xbf16>, vector<8x128xf32> -> vector<8x128xf32>
    %c0_10 = arith.constant 0 : index
    %c0_11 = arith.constant 0 : index
    %16 = vector.load %arg5[%c0_10, %c0_11] : memref<1x128xf32, #tpu.memory_space<vmem>>, vector<1x128xf32>
    %17 = vector.broadcast %16 : vector<1x128xf32> to vector<8x128xf32>
    %18 = arith.addf %15, %17 : vector<8x128xf32>
    %cst_12 = arith.constant 0.000000e+00 : f32
    %19 = vector.broadcast %cst_12 : f32 to vector<8x128xf32>
    %20 = arith.subf %19, %18 : vector<8x128xf32>
    %21 = math.exp %20 : vector<8x128xf32>
    %cst_13 = arith.constant 1.000000e+00 : f32
    %22 = vector.broadcast %cst_13 : f32 to vector<8x128xf32>
    %23 = arith.addf %22, %21 : vector<8x128xf32>
    %24 = tpu.reciprocal %23 {approx = true} : vector<8x128xf32> -> vector<8x128xf32>
    %25 = arith.mulf %18, %24 : vector<8x128xf32>
    %c0_14 = arith.constant 0 : index
    %c0_15 = arith.constant 0 : index
    %26 = vector.load %arg6[%c0_14, %c0_15] : memref<8x128xf32, #tpu.memory_space<vmem>>, vector<8x128xf32>
    tpu.vector_store %arg6[%c0_14, %c0_15], %25 {strides = array<i32>} : memref<8x128xf32, #tpu.memory_space<vmem>>, vector<8x128xf32>,
    return
  }
  func.func @transform_0(%arg0: i32) -> (i32, i32) {
    %c0_i32 = arith.constant 0 : i32
    %c0_i32_0 = arith.constant 0 : i32
    return %arg0, %c0_i32 : i32, i32
  }
  func.func @transform_1(%arg0: i32) -> (i32, i32) {
    %c0_i32 = arith.constant 0 : i32
    %c0_i32_0 = arith.constant 0 : i32
    %c0_i32_1 = arith.constant 0 : i32
    return %c0_i32, %c0_i32_0 : i32, i32
  }
  func.func @transform_2(%arg0: i32) -> (i32, i32) {
    %c0_i32 = arith.constant 0 : i32
    %c0_i32_0 = arith.constant 0 : i32
    %c0_i32_1 = arith.constant 0 : i32
    return %c0_i32, %c0_i32_0 : i32, i32
  }
  func.func @transform_3(%arg0: i32) -> (i32, i32) {
    %c0_i32 = arith.constant 0 : i32
    %c0_i32_0 = arith.constant 0 : i32
    %c0_i32_1 = arith.constant 0 : i32
    return %c0_i32, %c0_i32_0 : i32, i32
  }
  func.func @transform_4(%arg0: i32) -> (i32, i32) {
    %c0_i32 = arith.constant 0 : i32
    %c0_i32_0 = arith.constant 0 : i32
    %c0_i32_1 = arith.constant 0 : i32
    return %c0_i32, %c0_i32_0 : i32, i32
  }
  func.func @transform_5(%arg0: i32) -> (i32, i32) {
    %c0_i32 = arith.constant 0 : i32
    %c0_i32_0 = arith.constant 0 : i32
    return %arg0, %c0_i32 : i32, i32
  }
}

</mosaic_0001>

<bundles_post_ra>
// kernel: basic_net_forward.1
= control target key start
LH: loop header
LB: loop body
LE: loop exit
PB: predicated region body
PF: predicated region fallthrough
CT: control target
= control target key end

     0   :  { %v327_v1 = vmov 0.0   ;;  %vm328_vm0 = vmmov 0   ;;  %vm46_vm1 = vcmask 261120   ;;  %s411_s0 = inlined_call_operand.vmem [shape: bf16[8,32], index: 0, kind: input, shape index: {}]   ;;  %s412_s1 = inlined_call_operand.vmem [shape: bf16[32,128], index: 1, kind: input, shape index: {}]   ;;  %s413_s2 = inlined_call_operand.vmem [shape: f32[1,128], index: 2, kind: input, shape index: {}]   ;;  %s414_s3 = inlined_call_operand.vmem [shape: bf16[128,128], index: 3, kind: input, shape index: {}]   ;;  %s415_s4 = inlined_call_operand.vmem [shape: f32[1,128], index: 4, kind: input, shape index: {}]   ;;  %s416_s5 = inlined_call_operand.hbm [shape: f32[8,128], index: 5, kind: output, shape index: {}]  }
   0x1   :  { %v285_v0 = vld [vmem:[%s412_s1] sm:$0xff]   ;;  %254 = vmatprep.subr.bf16.mxu0 %v327_v1  ;;  %262 = vmatprep.subr.bf16.mxu1 %v327_v1  ;;  %v286_v2 = vld [vmem:[%s412_s1 + $0x8] sm:$0xff]  }
   0x2   :  { %255 = vmatpush3.bf16.msra.mxu0 %v285_v0  ;;  %258 = vmatprep.mubr.msk.bf16.mxu0 %vm328_vm0, %v327_v1  ;;  %v22_v3 = vld [vmem:[%s411_s0] sm:$0xf] }
   0x3   :  { %256 = vmatprep.subr.bf16.mxu0 %v327_v1  ;;  %278 = vmatprep.mubr.msk.bf16.mxu1 %vm328_vm0, %v327_v1 }
   0x6   :  { %257 = vmatpush3.bf16.msra.mxu0 %v286_v2 }
   0x7   :  { %10 = vsyncpa [#allocation3], 0  ;;  %v287_v4 = vld [vmem:[%s414_s3] sm:$0xff]   ;;  %v288_v5 = vld [vmem:[%s414_s3 + $0x8] sm:$0xff]  }
   0x8   :  { %263 = vmatpush3.bf16.msra.mxu1 %v287_v4  ;;  %v289_v6 = vld [vmem:[%s414_s3 + $0x10] sm:$0xff]   ;;  %v290_v7 = vld [vmem:[%s414_s3 + $0x18] sm:$0xff]   ;;  %v291_v8 = vld [vmem:[%s414_s3 + $0x20] sm:$0xff]  }
   0x9   :  { %259 = vmatmul.mubr.msk.bf16.vlgmr.msra.gmra.mrb[0].mxu0 %vm46_vm1, %v22_v3  ;;  %264 = vmatprep.subr.bf16.mxu1 %v327_v1  ;;  %v292_v9 = vld [vmem:[%s414_s3 + $0x28] sm:$0xff]   ;;  %v293_v10 = vld [vmem:[%s414_s3 + $0x30] sm:$0xff]   ;;  %v294_v11 = vld [vmem:[%s414_s3 + $0x38] sm:$0xff]  }
   0xa   :  { %v229_v12 = vld [vmem:[%s413_s2] ss:$0 sm:$0xff]  ;;  %s329_s2 = smov [#allocation2]  }
   0xb   :  { %v233_v25 = vld [vmem:[%s415_s4] ss:$0 sm:$0xff]  ;;  %s221_s16 = sshll.u32 %s329_s2, 4  ;;  %s222_s16 = int_to_ptr.vmem [resolvable:$true] %s221_s16 }
   0xc   :  { %265 = vmatpush3.bf16.msra.mxu1 %v288_v5  ;;  %s303_s17 = scalar_lea.vmem %s222_s16, 128  ;;  %p308_p1 = scmp.lt.s32.totalorder %s222_s16, %s222_s16 }
   0xd   :  { %266 = vmatprep.subr.bf16.mxu1 %v327_v1  ;;  %p304_p0 = scmp.ne.s32.totalorder %s222_s16, %s303_s17  ;;  %p309_p2 = scmp.lt.s32.totalorder %s303_s17, %s303_s17 }
   0xf   :  { %p310_p3 = por %p309_p2, %p308_p1 }
  0x10   :  { %267 = vmatpush3.bf16.msra.mxu1 %v289_v6 }
  0x11   :  { %268 = vmatprep.subr.bf16.mxu1 %v327_v1  ;;  %p311_p4 = pnand %p310_p3, %p304_p0 }
  0x14   :  { %269 = vmatpush3.bf16.msra.mxu1 %v290_v7 }
  0x15   :  { %270 = vmatprep.subr.bf16.mxu1 %v327_v1 }
  0x18   :  { %271 = vmatpush3.bf16.msra.mxu1 %v291_v8 }
  0x19   :  { %272 = vmatprep.subr.bf16.mxu1 %v327_v1 }
  0x1c   :  { %273 = vmatpush3.bf16.msra.mxu1 %v292_v9 }
  0x1d   :  { %274 = vmatprep.subr.bf16.mxu1 %v327_v1 }
  0x20   :  { %275 = vmatpush3.bf16.msra.mxu1 %v293_v10 }
  0x21   :  { %276 = vmatprep.subr.bf16.mxu1 %v327_v1 }
  0x24   :  { %277 = vmatpush3.bf16.msra.mxu1 %v294_v11 }
  0xdc   :  { %v84_v13 = vpop.f32.mrb[0].mxu0 }
  0xdd   :  { %v85_v14 = vadd.f32 %v229_v12, %v84_v13  ;;  %v260_v15 = vpop.f32.mrb[1].mxu0 }
  0xde   :  { %v87_v16 = vpop.f32.mrb[2].mxu0 }
  0xdf   :  { %v90_v17 = vsub.f32 0.0, %v85_v14  ;;  %v261_v18 = vpop.f32.mrb[3].mxu0 }
  0xe1   :  { %v91_v19 = vmul.f32 1.442695, %v90_v17 }
  0xe3   :  { %295 = vpow2.f32 %v91_v19 }
  0xed   :  { %v296_v20 = vpop.eup %295 }
  0xee   :  { %v93_v21 = vadd.f32 1.0, %v296_v20 }
  0xf0   :  { %297 = vrcp.f32 %v93_v21 }
  0xfa   :  { %v298_v22 = vpop.eup %297 }
  0xfb   :  { %v95_v23 = vmul.f32 %v298_v22, %v85_v14 }
  0xfd   :  { %v96_v24 = vpack.c.bf16 %v95_v23, %v95_v23 }
  0xff   :  { %279 = vmatmul.mubr.bf16.vlgmr.msra.gmra.mrb[0].mxu1 %v96_v24 }
 0x1d2   :  { %v202_v26 = vpop.f32.mrb[0].mxu1 }
 0x1d3   :  { %v203_v27 = vadd.f32 %v233_v25, %v202_v26  ;;  %v280_v28 = vpop.f32.mrb[1].mxu1 }
 0x1d4   :  { %v205_v29 = vpop.f32.mrb[2].mxu1 }
 0x1d5   :  { %v208_v30 = vsub.f32 0.0, %v203_v27  ;;  %v281_v31 = vpop.f32.mrb[3].mxu1 }
 0x1d7   :  { %v209_v32 = vmul.f32 1.442695, %v208_v30 }
 0x1d9   :  { %299 = vpow2.f32 %v209_v32 }
 0x1e3   :  { %v300_v33 = vpop.eup %299 }
 0x1e4   :  { %v211_v34 = vadd.f32 1.0, %v300_v33 }
 0x1e6   :  { %301 = vrcp.f32 %v211_v34 }
 0x1f0   :  { %v302_v35 = vpop.eup %301 }
 0x1f1   :  { %v213_v36 = vmul.f32 %v302_v35, %v203_v27 }
 0x1f3   :  { %214 = vst [vmem:[#allocation2] sm:$0xff] %v213_v36 }
 0x1f4   :  { %314 = shalt.err (!%p311_p4)
}
 0x1f5   :  { %s315_s19 = scalar_lea.hbm %s416_s5, 128 }
 0x1f6   :  { %p316_p5 = scmp.ne.s32.totalorder %s416_s5, %s315_s19  ;;  %p319_p6 = scmp.lt.u32.totalorder %s315_s19, %s416_s5 }
 0x1f8   :  { %p321_p7 = pnand %p319_p6, %p316_p5 }
 0x1fa   :  { %324 = shalt.err (!%p321_p7)
}
 0x1fb   :  { %224 = dma.vmem_to_hbm [thread:$0]  %s222_s16, 128, %s416_s5, [#allocation3]  }
 0x1fc   :  { %325 = dma.done.wait [#allocation3], 128  }
 0x1fd   :  { %326 = vsyncadd [#allocation3], 4294967168 }
 0x1fe   :  { %228 = vsyncpa [#allocation3], 1 }

</bundles_post_ra>
